<compile_context>
chip_gen: v5e
topology: v5e:2x2
jax: 0.10.0
libtpu: 0.0.40
codegen_flags: <defaults>
</compile_context>

<pallas_src>
import functools

import jax
import jax.numpy as jnp
from jax.experimental import pallas as pl
from jax.experimental.pallas import tpu as pltpu

KSIZE = 3          # kernel_size default of the module
BN_EPS = 1e-4      # BatchNorm eps in the module


def _align8(n):
    return ((n + 7) // 8) * 8


def _elu(x):
    # ELU(alpha=1): x if x > 0 else exp(x) - 1   (clamp exp arg to avoid overflow)
    return jnp.where(x > 0, x, jnp.exp(jnp.minimum(x, 0.0)) - 1.0)


def _shift_right(a, L):
    """a: (C, P) with P = N*L, batch-major flat lanes. Returns a[c, n*L + (l-1) mod L]."""
    P = a.shape[1]
    pos = jax.lax.broadcasted_iota(jnp.int32, a.shape, 1) % L
    main = pltpu.roll(a, 1 % P, axis=1)              # a[p-1]
    wrap = pltpu.roll(a, (P - L + 1) % P, axis=1)    # a[p + (L-1)]
    return jnp.where(pos == 0, wrap, main)


def _shift_left(a, L):
    """Returns a[c, n*L + (l+1) mod L]."""
    P = a.shape[1]
    pos = jax.lax.broadcasted_iota(jnp.int32, a.shape, 1) % L
    main = pltpu.roll(a, (P - 1) % P, axis=1)        # a[p+1]
    wrap = pltpu.roll(a, (L - 1) % P, axis=1)        # a[p - (L-1)]
    return jnp.where(pos == L - 1, wrap, main)


def _bn_pair(e, o, gamma, beta, inv_n):
    """Training-mode BatchNorm1d over the two phases (each (C, P)); biased var, f32."""
    s = jnp.sum(e, axis=1, keepdims=True) + jnp.sum(o, axis=1, keepdims=True)
    ssq = jnp.sum(e * e, axis=1, keepdims=True) + jnp.sum(o * o, axis=1, keepdims=True)
    mean = s * inv_n
    var = ssq * inv_n - mean * mean
    scale = gamma * jax.lax.rsqrt(var + BN_EPS)
    shift = beta - mean * scale
    return e * scale + shift, o * scale + shift


def resup_kernel(x_ref, w13_ref, w2_ref, pvec_ref, out_ref, *,
                 L, c_mid, c_out, cm8, co8):
    P = x_ref.shape[1]                       # = N * L
    inv_n = 1.0 / float(2 * P)               # BN count = N * (2L)

    pv = pvec_ref[...]
    b1, g1, be1 = pv[0:cm8, 0:1], pv[0:cm8, 1:2], pv[0:cm8, 2:3]
    b2, g2, be2 = pv[0:co8, 3:4], pv[0:co8, 4:5], pv[0:co8, 5:6]
    b3 = pv[0:co8, 6:7]

    # --- conv1 + conv3, both polyphase phases, fused into ONE matmul -------
    x = x_ref[...]
    x3 = jnp.concatenate([_shift_right(x, L), x, _shift_left(x, L)],
                         axis=0).astype(w13_ref.dtype)          # (3*Cin, P)
    r13 = jnp.dot(w13_ref[...], x3, preferred_element_type=jnp.float32)

    h1e = r13[0:cm8] + b1                        # conv1 even phase
    h1o = r13[cm8:2 * cm8] + b1                  # conv1 odd  phase
    ske = r13[2 * cm8:2 * cm8 + co8] + b3        # conv3 even phase (skip)
    sko = r13[2 * cm8 + co8:2 * cm8 + 2 * co8] + b3

    # --- bn1 -> ELU ---------------------------------------------------------
    h1e, h1o = _bn_pair(h1e, h1o, g1, be1, inv_n)
    h1e, h1o = _elu(h1e), _elu(h1o)

    # --- conv2 (tap-fused, per phase) + skip --------------------------------
    se = jnp.concatenate([_shift_right(h1o, L), h1e, h1o],
                         axis=0).astype(w2_ref.dtype)           # (3*cm8, P)
    so = jnp.concatenate([h1e, h1o, _shift_left(h1e, L)],
                         axis=0).astype(w2_ref.dtype)
    w2 = w2_ref[...]
    h2e = jnp.dot(w2, se, preferred_element_type=jnp.float32) + b2 + ske
    h2o = jnp.dot(w2, so, preferred_element_type=jnp.float32) + b2 + sko

    # --- bn2 -> ELU -> lane-dense phase slabs --------------------------------
    h2e, h2o = _bn_pair(h2e, h2o, g2, be2, inv_n)
    out_ref[0, :, :] = _elu(h2e[0:c_out, :])
    out_ref[1, :, :] = _elu(h2o[0:c_out, :])


def _poly_even(w):
    """PyTorch conv weight (Co, Ci, 3) -> even-phase polyphase slab (Co, 3*Ci)."""
    co, ci, _ = w.shape
    return jnp.concatenate(
        [w[:, :, 0], w[:, :, 1] + w[:, :, 2], jnp.zeros((co, ci), w.dtype)], axis=1)


def _poly_odd(w):
    co, ci, _ = w.shape
    return jnp.concatenate(
        [jnp.zeros((co, ci), w.dtype), w[:, :, 0] + w[:, :, 1], w[:, :, 2]], axis=1)


def _pad_rows(m, rows):
    return jnp.pad(m, ((0, rows - m.shape[0]), (0, 0)))


def resup_forward(x, params, matmul_dtype=jnp.float32):
    """x: (N, C_in, L) f32.  Returns (N, C_out, 2*L) f32 (ResUp forward, training BN)."""
    (w1, b1, g1, be1, w2, b2, g2, be2, w3, b3) = params
    N, c_in, L = x.shape
    c_mid, c_out = w1.shape[0], w2.shape[0]
    P = N * L
    cm8, co8 = _align8(c_mid), _align8(c_out)

    # NCL -> channel-major, batch folded into lanes: (C_in, N*L), f32.
    x_flat = jnp.transpose(x.astype(jnp.float32), (1, 0, 2)).reshape(c_in, P)

    # conv1/conv3 polyphase weights, 8-row-aligned blocks, fused output dim.
    w13 = jnp.concatenate([
        _pad_rows(_poly_even(w1.astype(jnp.float32)), cm8),
        _pad_rows(_poly_odd(w1.astype(jnp.float32)), cm8),
        _pad_rows(_poly_even(w3.astype(jnp.float32)), co8),
        _pad_rows(_poly_odd(w3.astype(jnp.float32)), co8)],
        axis=0).astype(matmul_dtype)                       # (2*cm8+2*co8, 3*C_in)

    # conv2 weights with the 3 taps flattened into the contraction dim.
    w2f = jnp.concatenate(
        [jnp.pad(w2[:, :, k].astype(jnp.float32), ((0, 0), (0, cm8 - c_mid)))
         for k in range(KSIZE)], axis=1)
    w2f = _pad_rows(w2f, co8).astype(matmul_dtype)         # (co8, 3*cm8)

    # All per-channel vectors packed into one small VMEM array (columns).
    rows = max(cm8, co8)

    def colv(v):
        v = v.astype(jnp.float32)
        return jnp.pad(v, (0, rows - v.shape[0]))[:, None]

    pvec = jnp.concatenate(
        [colv(b1), colv(g1), colv(be1), colv(b2), colv(g2), colv(be2), colv(b3),
         jnp.zeros((rows, 1), jnp.float32)], axis=1)       # (rows, 8)

    args = (x_flat, w13, w2f, pvec)
    nbytes = sum(int(a.size) * a.dtype.itemsize for a in args) + 2 * c_out * P * 4
    flops = 2 * P * w13.shape[0] * w13.shape[1] + 2 * (2 * P * w2f.shape[0] * w2f.shape[1])
    transcend = 2 * P * (cm8 + co8)

    vmem = pl.BlockSpec(memory_space=pltpu.MemorySpace.VMEM)
    kernel = functools.partial(resup_kernel, L=L, c_mid=c_mid, c_out=c_out,
                               cm8=cm8, co8=co8)

    out = pl.pallas_call(
        kernel,
        out_shape=jax.ShapeDtypeStruct((2, c_out, P), jnp.float32),
        in_specs=[vmem] * len(args),
        out_specs=vmem,
        compiler_params=pltpu.CompilerParams(vmem_limit_bytes=32 * 1024 * 1024),
        cost_estimate=pl.CostEstimate(flops=int(flops),
                                      transcendentals=int(transcend),
                                      bytes_accessed=int(nbytes)),
    )(*args)

    # Interleave even/odd phases back into NCL (wrapper-side layout plumbing).
    even = out[0].reshape(c_out, N, L)
    odd = out[1].reshape(c_out, N, L)
    y = jnp.stack([even, odd], axis=-1).reshape(c_out, N, 2 * L)
    return jnp.transpose(y, (1, 0, 2))


def ref_forward(x, params):
    """Pure-JAX reference mirroring the PyTorch ResUp forward (training-mode BN)."""
    (w1, b1, g1, be1, w2, b2, g2, be2, w3, b3) = params
    xu = jnp.repeat(x, 2, axis=-1)

    def conv(xin, w, b):             # circular Conv1d, pad = KSIZE // 2
        y = b[None, :, None]
        for k in range(KSIZE):
            y = y + jnp.einsum('oi,nil->nol', w[:, :, k],
                               jnp.roll(xin, 1 - k, axis=-1))
        return y

    def bn(h, g, be):
        mean = jnp.mean(h, axis=(0, 2), keepdims=True)
        var = jnp.var(h, axis=(0, 2), keepdims=True)
        return (h - mean) * jax.lax.rsqrt(var + BN_EPS) * g[None, :, None] + be[None, :, None]

    skip = conv(xu, w3, b3)
    h = jax.nn.elu(bn(conv(xu, w1, b1), g1, be1))
    h = conv(h, w2, b2)
    return jax.nn.elu(bn(h + skip, g2, be2))


if __name__ == "__main__":
    N, C_in, C_out, L = 2, 8, 8, 16
    C_mid = C_in // 2

    keys = jax.random.split(jax.random.PRNGKey(0), 11)
    x = jax.random.normal(keys[0], (N, C_in, L), dtype=jnp.float32)

    w1 = 0.3 * jax.random.normal(keys[1], (C_mid, C_in, KSIZE), dtype=jnp.float32)
    b1 = 0.1 * jax.random.normal(keys[2], (C_mid,), dtype=jnp.float32)
    g1 = 1.0 + 0.1 * jax.random.normal(keys[3], (C_mid,), dtype=jnp.float32)
    be1 = 0.1 * jax.random.normal(keys[4], (C_mid,), dtype=jnp.float32)

    w2 = 0.3 * jax.random.normal(keys[5], (C_out, C_mid, KSIZE), dtype=jnp.float32)
    b2 = 0.1 * jax.random.normal(keys[6], (C_out,), dtype=jnp.float32)
    g2 = 1.0 + 0.1 * jax.random.normal(keys[7], (C_out,), dtype=jnp.float32)
    be2 = 0.1 * jax.random.normal(keys[8], (C_out,), dtype=jnp.float32)

    w3 = 0.3 * jax.random.normal(keys[9], (C_out, C_in, KSIZE), dtype=jnp.float32)
    b3 = 0.1 * jax.random.normal(keys[10], (C_out,), dtype=jnp.float32)

    params = (w1, b1, g1, be1, w2, b2, g2, be2, w3, b3)

    out = jax.block_until_ready(resup_forward(x, params))
    ref = jax.block_until_ready(ref_forward(x, params))

    assert out.shape == (N, C_out, 2 * L), out.shape
    max_err = float(jnp.max(jnp.abs(out - ref)))
    if max_err > 2e-3:
        raise AssertionError(f"mismatch vs reference, max abs err = {max_err}")
    print("KERNEL_OK")
</pallas_src>

<mosaic_0001>
module attributes {stable_mosaic.version = 11 : i64} {
  func.func @resup_kernel(%arg0: memref<8x32xf32, #tpu.memory_space<vmem>>, %arg1: memref<32x24xf32, #tpu.memory_space<vmem>>, %arg2: memref<8x24xf32, #tpu.memory_space<vmem>>, %arg3: memref<8x8xf32, #tpu.memory_space<vmem>>, %arg4: memref<2x8x32xf32, #tpu.memory_space<vmem>>) attributes {dimension_semantics = [], scalar_prefetch = 0 : i64, scratch_operands = 0 : i64, tpu.core_type = #tpu.core_type<tc>} {
    %c0 = arith.constant 0 : index
    %c0_0 = arith.constant 0 : index
    %0 = vector.load %arg3[%c0, %c0_0] : memref<8x8xf32, #tpu.memory_space<vmem>>, vector<8x8xf32>
    %1 = vector.extract_strided_slice %0 {offsets = [0, 0], sizes = [8, 1], strides = [1, 1]} : vector<8x8xf32> to vector<8x1xf32>
    %2 = vector.extract_strided_slice %0 {offsets = [0, 1], sizes = [8, 1], strides = [1, 1]} : vector<8x8xf32> to vector<8x1xf32>
    %3 = vector.extract_strided_slice %0 {offsets = [0, 2], sizes = [8, 1], strides = [1, 1]} : vector<8x8xf32> to vector<8x1xf32>
    %4 = vector.extract_strided_slice %0 {offsets = [0, 3], sizes = [8, 1], strides = [1, 1]} : vector<8x8xf32> to vector<8x1xf32>
    %5 = vector.extract_strided_slice %0 {offsets = [0, 4], sizes = [8, 1], strides = [1, 1]} : vector<8x8xf32> to vector<8x1xf32>
    %6 = vector.extract_strided_slice %0 {offsets = [0, 5], sizes = [8, 1], strides = [1, 1]} : vector<8x8xf32> to vector<8x1xf32>
    %7 = vector.extract_strided_slice %0 {offsets = [0, 6], sizes = [8, 1], strides = [1, 1]} : vector<8x8xf32> to vector<8x1xf32>
    %c0_1 = arith.constant 0 : index
    %c0_2 = arith.constant 0 : index
    %8 = vector.load %arg0[%c0_1, %c0_2] : memref<8x32xf32, #tpu.memory_space<vmem>>, vector<8x32xf32>
    %9 = tpu.iota {dimensions = array<i32: 1>} : vector<8x32xi32>
    %c16_i32 = arith.constant 16 : i32
    %c0_i32 = arith.constant 0 : i32
    %10 = arith.cmpi eq, %c16_i32, %c0_i32 : i32
    %c1_i32 = arith.constant 1 : i32
    %11 = arith.select %10, %c1_i32, %c16_i32 : i32
    %12 = vector.broadcast %11 : i32 to vector<8x32xi32>
    %13 = arith.remsi %9, %12 : vector<8x32xi32>
    %c0_i32_3 = arith.constant 0 : i32
    %14 = vector.broadcast %c0_i32_3 : i32 to vector<8x32xi32>
    %15 = arith.cmpi ne, %13, %14 : vector<8x32xi32>
    %c0_i32_4 = arith.constant 0 : i32
    %16 = vector.broadcast %c0_i32_4 : i32 to vector<8x32xi32>
    %17 = arith.cmpi slt, %13, %16 : vector<8x32xi32>
    %c0_i32_5 = arith.constant 0 : i32
    %18 = arith.cmpi slt, %11, %c0_i32_5 : i32
    %19 = vector.broadcast %18 : i1 to vector<8x32xi1>
    %20 = vector.broadcast %19 : vector<8x32xi1> to vector<8x32xi1>
    %21 = arith.xori %17, %20 : vector<8x32xi1>
    %22 = arith.andi %21, %15 : vector<8x32xi1>
    %23 = vector.broadcast %11 : i32 to vector<8x32xi32>
    %24 = arith.addi %13, %23 : vector<8x32xi32>
    %25 = arith.select %22, %24, %13 : vector<8x32xi1>, vector<8x32xi32>
    %c1_i32_6 = arith.constant 1 : i32
    %26 = tpu.dynamic_rotate %8 by %c1_i32_6 dim 1 : vector<8x32xf32>, i32 -> vector<8x32xf32>
    %c17_i32 = arith.constant 17 : i32
    %27 = tpu.dynamic_rotate %8 by %c17_i32 dim 1 : vector<8x32xf32>, i32 -> vector<8x32xf32>
    %c0_i32_7 = arith.constant 0 : i32
    %28 = vector.broadcast %c0_i32_7 : i32 to vector<8x32xi32>
    %29 = arith.cmpi eq, %25, %28 : vector<8x32xi32>
    %30 = arith.select %29, %27, %26 : vector<8x32xi1>, vector<8x32xf32>
    %31 = tpu.iota {dimensions = array<i32: 1>} : vector<8x32xi32>
    %c16_i32_8 = arith.constant 16 : i32
    %c0_i32_9 = arith.constant 0 : i32
    %32 = arith.cmpi eq, %c16_i32_8, %c0_i32_9 : i32
    %c1_i32_10 = arith.constant 1 : i32
    %33 = arith.select %32, %c1_i32_10, %c16_i32_8 : i32
    %34 = vector.broadcast %33 : i32 to vector<8x32xi32>
    %35 = arith.remsi %31, %34 : vector<8x32xi32>
    %c0_i32_11 = arith.constant 0 : i32
    %36 = vector.broadcast %c0_i32_11 : i32 to vector<8x32xi32>
    %37 = arith.cmpi ne, %35, %36 : vector<8x32xi32>
    %c0_i32_12 = arith.constant 0 : i32
    %38 = vector.broadcast %c0_i32_12 : i32 to vector<8x32xi32>
    %39 = arith.cmpi slt, %35, %38 : vector<8x32xi32>
    %c0_i32_13 = arith.constant 0 : i32
    %40 = arith.cmpi slt, %33, %c0_i32_13 : i32
    %41 = vector.broadcast %40 : i1 to vector<8x32xi1>
    %42 = vector.broadcast %41 : vector<8x32xi1> to vector<8x32xi1>
    %43 = arith.xori %39, %42 : vector<8x32xi1>
    %44 = arith.andi %43, %37 : vector<8x32xi1>
    %45 = vector.broadcast %33 : i32 to vector<8x32xi32>
    %46 = arith.addi %35, %45 : vector<8x32xi32>
    %47 = arith.select %44, %46, %35 : vector<8x32xi1>, vector<8x32xi32>
    %c31_i32 = arith.constant 31 : i32
    %48 = tpu.dynamic_rotate %8 by %c31_i32 dim 1 : vector<8x32xf32>, i32 -> vector<8x32xf32>
    %c15_i32 = arith.constant 15 : i32
    %49 = tpu.dynamic_rotate %8 by %c15_i32 dim 1 : vector<8x32xf32>, i32 -> vector<8x32xf32>
    %c15_i32_14 = arith.constant 15 : i32
    %50 = vector.broadcast %c15_i32_14 : i32 to vector<8x32xi32>
    %51 = arith.cmpi eq, %47, %50 : vector<8x32xi32>
    %52 = arith.select %51, %49, %48 : vector<8x32xi1>, vector<8x32xf32>
    %53 = tpu.concatenate %30, %8, %52 in 0 : vector<8x32xf32>, vector<8x32xf32>, vector<8x32xf32> -> vector<24x32xf32>
    %c0_15 = arith.constant 0 : index
    %c0_16 = arith.constant 0 : index
    %54 = vector.load %arg1[%c0_15, %c0_16] : memref<32x24xf32, #tpu.memory_space<vmem>>, vector<32x24xf32>
    %cst = arith.constant dense<0.000000e+00> : vector<32x32xf32>
    %55 = tpu.matmul %54, %53, %cst {dimension_numbers = #tpu.dot_dimension_numbers<[1], [0], [0], [1], [0, 0, 1, 1], [], []>} : vector<32x24xf32>, vector<24x32xf32>, vector<32x32xf32> -> vector<32x32xf32>
    %56 = vector.extract_strided_slice %55 {offsets = [0, 0], sizes = [8, 32], strides = [1, 1]} : vector<32x32xf32> to vector<8x32xf32>
    %57 = vector.broadcast %1 : vector<8x1xf32> to vector<8x32xf32>
    %58 = arith.addf %56, %57 : vector<8x32xf32>
    %59 = vector.extract_strided_slice %55 {offsets = [8, 0], sizes = [8, 32], strides = [1, 1]} : vector<32x32xf32> to vector<8x32xf32>
    %60 = vector.broadcast %1 : vector<8x1xf32> to vector<8x32xf32>
    %61 = arith.addf %59, %60 : vector<8x32xf32>
    %62 = vector.extract_strided_slice %55 {offsets = [16, 0], sizes = [8, 32], strides = [1, 1]} : vector<32x32xf32> to vector<8x32xf32>
    %63 = vector.broadcast %7 : vector<8x1xf32> to vector<8x32xf32>
    %64 = arith.addf %62, %63 : vector<8x32xf32>
    %65 = vector.extract_strided_slice %55 {offsets = [24, 0], sizes = [8, 32], strides = [1, 1]} : vector<32x32xf32> to vector<8x32xf32>
    %66 = vector.broadcast %7 : vector<8x1xf32> to vector<8x32xf32>
    %67 = arith.addf %65, %66 : vector<8x32xf32>
    %cst_17 = arith.constant dense<0.000000e+00> : vector<8xf32>
    %68 = vector.multi_reduction <add>, %58, %cst_17 [1] : vector<8x32xf32> to vector<8xf32>
    %69 = vector.shape_cast %68 : vector<8xf32> to vector<8x1xf32>
    %cst_18 = arith.constant dense<0.000000e+00> : vector<8xf32>
    %70 = vector.multi_reduction <add>, %61, %cst_18 [1] : vector<8x32xf32> to vector<8xf32>
    %71 = vector.shape_cast %70 : vector<8xf32> to vector<8x1xf32>
    %72 = arith.addf %69, %71 : vector<8x1xf32>
    %73 = arith.mulf %58, %58 : vector<8x32xf32>
    %cst_19 = arith.constant dense<0.000000e+00> : vector<8xf32>
    %74 = vector.multi_reduction <add>, %73, %cst_19 [1] : vector<8x32xf32> to vector<8xf32>
    %75 = vector.shape_cast %74 : vector<8xf32> to vector<8x1xf32>
    %76 = arith.mulf %61, %61 : vector<8x32xf32>
    %cst_20 = arith.constant dense<0.000000e+00> : vector<8xf32>
    %77 = vector.multi_reduction <add>, %76, %cst_20 [1] : vector<8x32xf32> to vector<8xf32>
    %78 = vector.shape_cast %77 : vector<8xf32> to vector<8x1xf32>
    %79 = arith.addf %75, %78 : vector<8x1xf32>
    %cst_21 = arith.constant 1.562500e-02 : f32
    %80 = vector.broadcast %cst_21 : f32 to vector<8x1xf32>
    %81 = arith.mulf %72, %80 : vector<8x1xf32>
    %cst_22 = arith.constant 1.562500e-02 : f32
    %82 = vector.broadcast %cst_22 : f32 to vector<8x1xf32>
    %83 = arith.mulf %79, %82 : vector<8x1xf32>
    %84 = arith.mulf %81, %81 : vector<8x1xf32>
    %85 = arith.subf %83, %84 : vector<8x1xf32>
    %cst_23 = arith.constant 9.99999974E-5 : f32
    %86 = vector.broadcast %cst_23 : f32 to vector<8x1xf32>
    %87 = arith.addf %85, %86 : vector<8x1xf32>
    %88 = math.rsqrt %87 : vector<8x1xf32>
    %89 = arith.mulf %2, %88 : vector<8x1xf32>
    %90 = arith.mulf %81, %89 : vector<8x1xf32>
    %91 = arith.subf %3, %90 : vector<8x1xf32>
    %92 = vector.broadcast %89 : vector<8x1xf32> to vector<8x32xf32>
    %93 = arith.mulf %58, %92 : vector<8x32xf32>
    %94 = vector.broadcast %91 : vector<8x1xf32> to vector<8x32xf32>
    %95 = arith.addf %93, %94 : vector<8x32xf32>
    %96 = vector.broadcast %89 : vector<8x1xf32> to vector<8x32xf32>
    %97 = arith.mulf %61, %96 : vector<8x32xf32>
    %98 = vector.broadcast %91 : vector<8x1xf32> to vector<8x32xf32>
    %99 = arith.addf %97, %98 : vector<8x32xf32>
    %cst_24 = arith.constant 0.000000e+00 : f32
    %100 = vector.broadcast %cst_24 : f32 to vector<8x32xf32>
    %101 = arith.cmpf ogt, %95, %100 : vector<8x32xf32>
    %cst_25 = arith.constant 0.000000e+00 : f32
    %102 = vector.broadcast %cst_25 : f32 to vector<8x32xf32>
    %103 = arith.minimumf %95, %102 : vector<8x32xf32>
    %104 = math.exp %103 : vector<8x32xf32>
    %cst_26 = arith.constant 1.000000e+00 : f32
    %105 = vector.broadcast %cst_26 : f32 to vector<8x32xf32>
    %106 = arith.subf %104, %105 : vector<8x32xf32>
    %107 = arith.select %101, %95, %106 : vector<8x32xi1>, vector<8x32xf32>
    %cst_27 = arith.constant 0.000000e+00 : f32
    %108 = vector.broadcast %cst_27 : f32 to vector<8x32xf32>
    %109 = arith.cmpf ogt, %99, %108 : vector<8x32xf32>
    %cst_28 = arith.constant 0.000000e+00 : f32
    %110 = vector.broadcast %cst_28 : f32 to vector<8x32xf32>
    %111 = arith.minimumf %99, %110 : vector<8x32xf32>
    %112 = math.exp %111 : vector<8x32xf32>
    %cst_29 = arith.constant 1.000000e+00 : f32
    %113 = vector.broadcast %cst_29 : f32 to vector<8x32xf32>
    %114 = arith.subf %112, %113 : vector<8x32xf32>
    %115 = arith.select %109, %99, %114 : vector<8x32xi1>, vector<8x32xf32>
    %116 = tpu.iota {dimensions = array<i32: 1>} : vector<8x32xi32>
    %c16_i32_30 = arith.constant 16 : i32
    %c0_i32_31 = arith.constant 0 : i32
    %117 = arith.cmpi eq, %c16_i32_30, %c0_i32_31 : i32
    %c1_i32_32 = arith.constant 1 : i32
    %118 = arith.select %117, %c1_i32_32, %c16_i32_30 : i32
    %119 = vector.broadcast %118 : i32 to vector<8x32xi32>
    %120 = arith.remsi %116, %119 : vector<8x32xi32>
    %c0_i32_33 = arith.constant 0 : i32
    %121 = vector.broadcast %c0_i32_33 : i32 to vector<8x32xi32>
    %122 = arith.cmpi ne, %120, %121 : vector<8x32xi32>
    %c0_i32_34 = arith.constant 0 : i32
    %123 = vector.broadcast %c0_i32_34 : i32 to vector<8x32xi32>
    %124 = arith.cmpi slt, %120, %123 : vector<8x32xi32>
    %c0_i32_35 = arith.constant 0 : i32
    %125 = arith.cmpi slt, %118, %c0_i32_35 : i32
    %126 = vector.broadcast %125 : i1 to vector<8x32xi1>
    %127 = vector.broadcast %126 : vector<8x32xi1> to vector<8x32xi1>
    %128 = arith.xori %124, %127 : vector<8x32xi1>
    %129 = arith.andi %128, %122 : vector<8x32xi1>
    %130 = vector.broadcast %118 : i32 to vector<8x32xi32>
    %131 = arith.addi %120, %130 : vector<8x32xi32>
    %132 = arith.select %129, %131, %120 : vector<8x32xi1>, vector<8x32xi32>
    %c1_i32_36 = arith.constant 1 : i32
    %133 = tpu.dynamic_rotate %115 by %c1_i32_36 dim 1 : vector<8x32xf32>, i32 -> vector<8x32xf32>
    %c17_i32_37 = arith.constant 17 : i32
    %134 = tpu.dynamic_rotate %115 by %c17_i32_37 dim 1 : vector<8x32xf32>, i32 -> vector<8x32xf32>
    %c0_i32_38 = arith.constant 0 : i32
    %135 = vector.broadcast %c0_i32_38 : i32 to vector<8x32xi32>
    %136 = arith.cmpi eq, %132, %135 : vector<8x32xi32>
    %137 = arith.select %136, %134, %133 : vector<8x32xi1>, vector<8x32xf32>
    %138 = tpu.concatenate %137, %107, %115 in 0 : vector<8x32xf32>, vector<8x32xf32>, vector<8x32xf32> -> vector<24x32xf32>
    %139 = tpu.iota {dimensions = array<i32: 1>} : vector<8x32xi32>
    %c16_i32_39 = arith.constant 16 : i32
    %c0_i32_40 = arith.constant 0 : i32
    %140 = arith.cmpi eq, %c16_i32_39, %c0_i32_40 : i32
    %c1_i32_41 = arith.constant 1 : i32
    %141 = arith.select %140, %c1_i32_41, %c16_i32_39 : i32
    %142 = vector.broadcast %141 : i32 to vector<8x32xi32>
    %143 = arith.remsi %139, %142 : vector<8x32xi32>
    %c0_i32_42 = arith.constant 0 : i32
    %144 = vector.broadcast %c0_i32_42 : i32 to vector<8x32xi32>
    %145 = arith.cmpi ne, %143, %144 : vector<8x32xi32>
    %c0_i32_43 = arith.constant 0 : i32
    %146 = vector.broadcast %c0_i32_43 : i32 to vector<8x32xi32>
    %147 = arith.cmpi slt, %143, %146 : vector<8x32xi32>
    %c0_i32_44 = arith.constant 0 : i32
    %148 = arith.cmpi slt, %141, %c0_i32_44 : i32
    %149 = vector.broadcast %148 : i1 to vector<8x32xi1>
    %150 = vector.broadcast %149 : vector<8x32xi1> to vector<8x32xi1>
    %151 = arith.xori %147, %150 : vector<8x32xi1>
    %152 = arith.andi %151, %145 : vector<8x32xi1>
    %153 = vector.broadcast %141 : i32 to vector<8x32xi32>
    %154 = arith.addi %143, %153 : vector<8x32xi32>
    %155 = arith.select %152, %154, %143 : vector<8x32xi1>, vector<8x32xi32>
    %c31_i32_45 = arith.constant 31 : i32
    %156 = tpu.dynamic_rotate %107 by %c31_i32_45 dim 1 : vector<8x32xf32>, i32 -> vector<8x32xf32>
    %c15_i32_46 = arith.constant 15 : i32
    %157 = tpu.dynamic_rotate %107 by %c15_i32_46 dim 1 : vector<8x32xf32>, i32 -> vector<8x32xf32>
    %c15_i32_47 = arith.constant 15 : i32
    %158 = vector.broadcast %c15_i32_47 : i32 to vector<8x32xi32>
    %159 = arith.cmpi eq, %155, %158 : vector<8x32xi32>
    %160 = arith.select %159, %157, %156 : vector<8x32xi1>, vector<8x32xf32>
    %161 = tpu.concatenate %107, %115, %160 in 0 : vector<8x32xf32>, vector<8x32xf32>, vector<8x32xf32> -> vector<24x32xf32>
    %c0_48 = arith.constant 0 : index
    %c0_49 = arith.constant 0 : index
    %162 = vector.load %arg2[%c0_48, %c0_49] : memref<8x24xf32, #tpu.memory_space<vmem>>, vector<8x24xf32>
    %cst_50 = arith.constant dense<0.000000e+00> : vector<8x32xf32>
    %163 = tpu.matmul %162, %138, %cst_50 {dimension_numbers = #tpu.dot_dimension_numbers<[1], [0], [0], [1], [0, 0, 1, 1], [], []>} : vector<8x24xf32>, vector<24x32xf32>, vector<8x32xf32> -> vector<8x32xf32>
    %164 = vector.broadcast %4 : vector<8x1xf32> to vector<8x32xf32>
    %165 = arith.addf %163, %164 : vector<8x32xf32>
    %166 = arith.addf %165, %64 : vector<8x32xf32>
    %cst_51 = arith.constant dense<0.000000e+00> : vector<8x32xf32>
    %167 = tpu.matmul %162, %161, %cst_51 {dimension_numbers = #tpu.dot_dimension_numbers<[1], [0], [0], [1], [0, 0, 1, 1], [], []>} : vector<8x24xf32>, vector<24x32xf32>, vector<8x32xf32> -> vector<8x32xf32>
    %168 = vector.broadcast %4 : vector<8x1xf32> to vector<8x32xf32>
    %169 = arith.addf %167, %168 : vector<8x32xf32>
    %170 = arith.addf %169, %67 : vector<8x32xf32>
    %cst_52 = arith.constant dense<0.000000e+00> : vector<8xf32>
    %171 = vector.multi_reduction <add>, %166, %cst_52 [1] : vector<8x32xf32> to vector<8xf32>
    %172 = vector.shape_cast %171 : vector<8xf32> to vector<8x1xf32>
    %cst_53 = arith.constant dense<0.000000e+00> : vector<8xf32>
    %173 = vector.multi_reduction <add>, %170, %cst_53 [1] : vector<8x32xf32> to vector<8xf32>
    %174 = vector.shape_cast %173 : vector<8xf32> to vector<8x1xf32>
    %175 = arith.addf %172, %174 : vector<8x1xf32>
    %176 = arith.mulf %166, %166 : vector<8x32xf32>
    %cst_54 = arith.constant dense<0.000000e+00> : vector<8xf32>
    %177 = vector.multi_reduction <add>, %176, %cst_54 [1] : vector<8x32xf32> to vector<8xf32>
    %178 = vector.shape_cast %177 : vector<8xf32> to vector<8x1xf32>
    %179 = arith.mulf %170, %170 : vector<8x32xf32>
    %cst_55 = arith.constant dense<0.000000e+00> : vector<8xf32>
    %180 = vector.multi_reduction <add>, %179, %cst_55 [1] : vector<8x32xf32> to vector<8xf32>
    %181 = vector.shape_cast %180 : vector<8xf32> to vector<8x1xf32>
    %182 = arith.addf %178, %181 : vector<8x1xf32>
    %cst_56 = arith.constant 1.562500e-02 : f32
    %183 = vector.broadcast %cst_56 : f32 to vector<8x1xf32>
    %184 = arith.mulf %175, %183 : vector<8x1xf32>
    %cst_57 = arith.constant 1.562500e-02 : f32
    %185 = vector.broadcast %cst_57 : f32 to vector<8x1xf32>
    %186 = arith.mulf %182, %185 : vector<8x1xf32>
    %187 = arith.mulf %184, %184 : vector<8x1xf32>
    %188 = arith.subf %186, %187 : vector<8x1xf32>
    %cst_58 = arith.constant 9.99999974E-5 : f32
    %189 = vector.broadcast %cst_58 : f32 to vector<8x1xf32>
    %190 = arith.addf %188, %189 : vector<8x1xf32>
    %191 = math.rsqrt %190 : vector<8x1xf32>
    %192 = arith.mulf %5, %191 : vector<8x1xf32>
    %193 = arith.mulf %184, %192 : vector<8x1xf32>
    %194 = arith.subf %6, %193 : vector<8x1xf32>
    %195 = vector.broadcast %192 : vector<8x1xf32> to vector<8x32xf32>
    %196 = arith.mulf %166, %195 : vector<8x32xf32>
    %197 = vector.broadcast %194 : vector<8x1xf32> to vector<8x32xf32>
    %198 = arith.addf %196, %197 : vector<8x32xf32>
    %199 = vector.broadcast %192 : vector<8x1xf32> to vector<8x32xf32>
    %200 = arith.mulf %170, %199 : vector<8x32xf32>
    %201 = vector.broadcast %194 : vector<8x1xf32> to vector<8x32xf32>
    %202 = arith.addf %200, %201 : vector<8x32xf32>
    %cst_59 = arith.constant 0.000000e+00 : f32
    %203 = vector.broadcast %cst_59 : f32 to vector<8x32xf32>
    %204 = arith.cmpf ogt, %198, %203 : vector<8x32xf32>
    %cst_60 = arith.constant 0.000000e+00 : f32
    %205 = vector.broadcast %cst_60 : f32 to vector<8x32xf32>
    %206 = arith.minimumf %198, %205 : vector<8x32xf32>
    %207 = math.exp %206 : vector<8x32xf32>
    %cst_61 = arith.constant 1.000000e+00 : f32
    %208 = vector.broadcast %cst_61 : f32 to vector<8x32xf32>
    %209 = arith.subf %207, %208 : vector<8x32xf32>
    %210 = arith.select %204, %198, %209 : vector<8x32xi1>, vector<8x32xf32>
    %c0_62 = arith.constant 0 : index
    %c0_63 = arith.constant 0 : index
    %c0_64 = arith.constant 0 : index
    %211 = vector.load %arg4[%c0_62, %c0_63, %c0_64] : memref<2x8x32xf32, #tpu.memory_space<vmem>>, vector<1x8x32xf32>
    %212 = vector.shape_cast %211 : vector<1x8x32xf32> to vector<8x32xf32>
    %213 = vector.shape_cast %210 : vector<8x32xf32> to vector<1x8x32xf32>
    tpu.vector_store %arg4[%c0_62, %c0_63, %c0_64], %213 {strides = array<i32>} : memref<2x8x32xf32, #tpu.memory_space<vmem>>, vector<1x8x32xf32>,
    %cst_65 = arith.constant 0.000000e+00 : f32
    %214 = vector.broadcast %cst_65 : f32 to vector<8x32xf32>
    %215 = arith.cmpf ogt, %202, %214 : vector<8x32xf32>
    %cst_66 = arith.constant 0.000000e+00 : f32
    %216 = vector.broadcast %cst_66 : f32 to vector<8x32xf32>
    %217 = arith.minimumf %202, %216 : vector<8x32xf32>
    %218 = math.exp %217 : vector<8x32xf32>
    %cst_67 = arith.constant 1.000000e+00 : f32
    %219 = vector.broadcast %cst_67 : f32 to vector<8x32xf32>
    %220 = arith.subf %218, %219 : vector<8x32xf32>
    %221 = arith.select %215, %202, %220 : vector<8x32xi1>, vector<8x32xf32>
    %c1 = arith.constant 1 : index
    %c0_68 = arith.constant 0 : index
    %c0_69 = arith.constant 0 : index
    %222 = vector.load %arg4[%c1, %c0_68, %c0_69] : memref<2x8x32xf32, #tpu.memory_space<vmem>>, vector<1x8x32xf32>
    %223 = vector.shape_cast %222 : vector<1x8x32xf32> to vector<8x32xf32>
    %224 = vector.shape_cast %221 : vector<8x32xf32> to vector<1x8x32xf32>
    tpu.vector_store %arg4[%c1, %c0_68, %c0_69], %224 {strides = array<i32>} : memref<2x8x32xf32, #tpu.memory_space<vmem>>, vector<1x8x32xf32>,
    return
  }
}

</mosaic_0001>

<bundles_post_ra>
// kernel: tpu_custom_call.1
= control target key start
LH: loop header
LB: loop body
LE: loop exit
PB: predicated region body
PF: predicated region fallthrough
CT: control target
= control target key end

     0   :  { %s547_s0 = inlined_call_operand.vmem [shape: f32[8,32], index: 0, kind: input, shape index: {}]   ;;  %s548_s1 = inlined_call_operand.vmem [shape: f32[32,24], index: 1, kind: input, shape index: {}]   ;;  %s549_s2 = inlined_call_operand.vmem [shape: f32[8,24], index: 2, kind: input, shape index: {}]   ;;  %s550_s3 = inlined_call_operand.vmem [shape: f32[8,8], index: 3, kind: input, shape index: {}]   ;;  %s551_s4 = inlined_call_operand.hbm [shape: f32[2,8,32], index: 4, kind: output, shape index: {}]  }
   0x1   :  { %v19_v0 = vld [vmem:[%s547_s0] sm:$0xff] }
   0x2   :  { %9 = vsyncpa [#allocation3], 0  ;;  %s419_s17 = smov 32   ;;  %vm34_vm0 = vcmask 1047808   ;;  %s420_s18 = smov 113   ;;  %v474_v5 = vld [vmem:[%s550_s3] sm:$0xff]  ;;  %v20_v7 = vlaneseq }
   0x3   :  { %35 = vrot.lane.b32.xlu0 %v19_v0, %s419_s17  ;;  %s421_s19 = smov 111   ;;  %s422_s0 = smov 97   ;;  %v424_v6 = vmov 0   ;;  %v58_v17 = vld [vmem:[%s548_s1] sm:$0xff]  ;;  %vm62_vm3 = vcmask 195584   ;;  %v59_v19 = vld [vmem:[%s548_s1 + $0x8] sm:$0xff] }
   0x4   :  { %s423_s20 = smov 127   ;;  %374 = vset.pattern.permute.xlu0 %v424_v6  ;;  %v21_v10 = vand.u32 127, %v20_v7  ;;  %vm117_vm4 = vcmask 261120   ;;  %v425_v31 = vmov 1   ;;  %s426_s26 = smov 1   ;;  %v427_v52 = vmov 2  }
   0x5   :  { %375 = vset.pattern.permute.xlu2 %v425_v31  ;;  %s333_s9 = sshll.u32 %s551_s4, 4  ;;  %s433_s10 = smov 128   ;;  %s334_s9 = int_to_ptr.hbm [resolvable:$true] %s333_s9 }
   0x6   :  { %v26_v11 = vand.u32 15, %v21_v10  ;;  %s434_s11 = smov 8  }
   0x8   :  { %vm477_vm1 = vcmp.eq.s32.totalorder %v26_v11, 15  ;;  %vm483_vm2 = vcmp.eq.s32.totalorder %v26_v11, 0 }
  0x75   :  { %v36_v1 = vpop.permute.xlu0 %35 }
  0x76   :  { %v37_v2 = vsel %vm34_vm0, %v36_v1, %v19_v0 }
  0x77   :  { %38 = vrot.lane.b32.xlu0 %v37_v2, %s419_s17 }
  0x7f   :  { %106 = vperm.xlu0 %374, %v474_v5  }
  0x87   :  { %376 = vset.pattern.permute.xlu0 %v427_v52 }
  0xe9   :  { %v39_v3 = vpop.permute.xlu0 %38 }
  0xea   :  { %v40_v4 = vsel %vm34_vm0, %v39_v3, %v19_v0 }
  0xeb   :  { %43 = vrot.lane.b32.xlu2 %v40_v4, %s420_s18  ;;  %51 = vrot.lane.b32.xlu1 %v40_v4, %s421_s19 }
  0xf1   :  { %v107_v20 = vpop.permute.xlu0 %106 }
  0xf3   :  { %46 = vrot.lane.b32.xlu2 %v40_v4, %s422_s0  ;;  %54 = vrot.lane.b32.xlu1 %v40_v4, %s423_s20 }
 0x145   :  { %v44_v8 = vpop.permute.xlu2 %43 }
 0x14d   :  { %v47_v15 = vpop.permute.xlu2 %46 }
 0x14e   :  { %v49_v18 = vsel %vm483_vm2, %v44_v8, %v47_v15 }
 0x15d   :  { %v52_v9 = vpop.permute.xlu1 %51 }
 0x165   :  { %v55_v13 = vpop.permute.xlu1 %54 }
 0x166   :  { %v57_v14 = vsel %vm477_vm1, %v52_v9, %v55_v13 }
 0x167   :  { %88 = vmatpush.msra.mxu0 %v57_v14  ;;  %355 = vmatpush.msra.mxu3 %v57_v14 }
 0x169   :  { %89 = vmatpush.msra.mxu0 %v19_v0  ;;  %356 = vmatpush.msra.mxu3 %v19_v0 }
 0x16b   :  { %90 = vmatpush.msra.mxu0 %v49_v18  ;;  %357 = vmatpush.msra.mxu3 %v49_v18  ;;  %v60_v18 = vld [vmem:[%s548_s1 + $0x10] sm:$0xff] }
 0x16c   :  { %345 = vmatmul.msk.f32.vlgmr.msra.gmra.mxu0 %vm62_vm3, %v58_v17  ;;  %347 = vmatmul.msk.f32.vlgmr.msra.gmra.mxu3 %vm62_vm3, %v60_v18 }
 0x174   :  { %346 = vmatmul.msk.f32.gmra.mxu0 %vm62_vm3, %v59_v19  ;;  %v61_v19 = vld [vmem:[%s548_s1 + $0x18] sm:$0xff]  ;;  %s432_s1 = smov [#allocation2]  }
 0x175   :  { %348 = vmatmul.msk.f32.gmra.mxu3 %vm62_vm3, %v61_v19 }
 0x1e9   :  { %v92_v21 = vpop.f32.mrf.mxu0 }
 0x1ea   :  { %v109_v22 = vadd.f32 %v107_v20, %v92_v21  ;;  %v429_v21 = vmov 3  }
 0x1eb   :  { %378 = vset.pattern.permute.xlu1 %v429_v21 }
 0x1ec   :  { %v118_v23 = vsel %vm117_vm4, %v109_v22, 0.0  ;;  %v125_v24 = vmul.f32 %v109_v22, %v109_v22 }
 0x1ed   :  { %119 = vadd.xlane.f32.xlu1 %v118_v23 }
 0x1ee   :  { %v126_v25 = vsel %vm117_vm4, %v125_v24, 0.0 }
 0x1ef   :  { %127 = vadd.xlane.f32.xlu0 %v126_v25  ;;  %v210_v25 = vld [vmem:[%s549_s2] sm:$0xff]  ;;  %s331_s2 = sshll.u32 %s432_s1, 4  ;;  %s332_s2 = int_to_ptr.vmem [resolvable:$true] %s331_s2 }
 0x1f1   :  { %v95_v26 = vpop.f32.mrf.mxu0 }
 0x1f2   :  { %v110_v27 = vadd.f32 %v107_v20, %v95_v26  ;;  %v428_v20 = vmov 6  }
 0x1f4   :  { %v121_v28 = vsel %vm117_vm4, %v110_v27, 0.0  ;;  %v129_v29 = vmul.f32 %v110_v27, %v110_v27 }
 0x1f5   :  { %122 = vadd.xlane.f32.xlu2 %v121_v28 }
 0x1f6   :  { %v130_v30 = vsel %vm117_vm4, %v129_v29, 0.0  ;;  %v98_v29 = vpop.f32.mrf.mxu3 }
 0x1fd   :  { %131 = vadd.xlane.f32.xlu2 %v130_v30 }
 0x1fe   :  { %v101_v31 = vpop.f32.mrf.mxu3 }
 0x260   :  { %v120_v33 = vpop.xlane.xlu1 %119 }
 0x262   :  { %v128_v36 = vpop.xlane.xlu0 %127 }
 0x268   :  { %v123_v32 = vpop.xlane.xlu2 %122 }
 0x269   :  { %v124_v34 = vadd.f32 %v123_v32, %v120_v33 }
 0x26b   :  { %v134_v35 = vmul.f32 0.015625, %v124_v34 }
 0x26d   :  { %v136_v39 = vmul.f32 %v134_v35, %v134_v35 }
 0x270   :  { %v132_v37 = vpop.xlane.xlu2 %131 }
 0x271   :  { %v133_v38 = vadd.f32 %v132_v37, %v128_v36 }
 0x273   :  { %v135_v40 = vmul.f32 0.015625, %v133_v38 }
 0x275   :  { %v137_v41 = vsub.f32 %v135_v40, %v136_v39 }
 0x277   :  { %v138_v42 = vadd.f32 0.0001, %v137_v41 }
 0x279   :  { %381 = vrsqrt.f32 %v138_v42  ;;  %vm145_vm6 = vweird.f32 %v138_v42 }
 0x27f   :  { %v382_v43 = vpop.eup %381 }
 0x280   :  { %v140_v44 = vmul.f32 %v382_v43, %v138_v42  ;;  %vm146_vm5 = vweird.f32 %v382_v43 }
 0x281   :  { %vm147_vm7 = vmor %vm145_vm6, %vm146_vm5 }
 0x282   :  { %v141_v45 = vmul.f32 %v382_v43, %v140_v44 }
 0x284   :  { %v142_v46 = vmul.f32 0.5, %v141_v45  ;;  %v430_v45 = vmov 4  }
 0x286   :  { %v143_v47 = vsub.f32 1.5, %v142_v46 }
 0x288   :  { %v144_v48 = vmul.f32 %v382_v43, %v143_v47 }
 0x28a   :  { %v148_v49 = vsel %vm147_vm7, %v382_v43, %v144_v48 }
 0x28b   :  { %v149_v50 = vmul.f32 %v148_v49, %v474_v5 }
 0x28d   :  { %158 = vperm.xlu2 %375, %v149_v50   ;;  %v150_v51 = vmul.f32 %v149_v50, %v134_v35 }
 0x28f   :  { %152 = vrot.lane.b32.xlu1 %v150_v51, %s426_s26 }
 0x295   :  { %379 = vset.pattern.permute.xlu2 %v430_v45 }
 0x2e7   :  { %v159_v55 = vpop.permute.xlu2 %158 }
 0x2e8   :  { %v161_v56 = vmul.f32 %v159_v55, %v109_v22  ;;  %v168_v57 = vmul.f32 %v159_v55, %v110_v27 }
 0x301   :  { %v153_v53 = vpop.permute.xlu1 %152 }
 0x302   :  { %v155_v54 = vsub.f32 %v474_v5, %v153_v53 }
 0x304   :  { %164 = vperm.xlu0 %376, %v155_v54  }
 0x30c   :  { %377 = vset.pattern.permute.xlu0 %v428_v20 }
 0x30d   :  { %112 = vperm.xlu0 %377, %v474_v5  }
 0x376   :  { %v165_v58 = vpop.permute.xlu0 %164 }
 0x377   :  { %v167_v59 = vadd.f32 %v165_v58, %v161_v56  ;;  %v169_v60 = vadd.f32 %v168_v57, %v165_v58 }
 0x379   :  { %v171_v61 = vmin.f32 %v167_v59, 0.0  ;;  %v177_v62 = vmin.f32 %v169_v60, 0.0  ;;  %vm170_vm8 = vcmp.gt.f32.partialorder %v167_v59, 0.0  ;;  %vm176_vm9 = vcmp.gt.f32.partialorder %v169_v60, 0.0 }
 0x37b   :  { %v172_v63 = vmul.f32 1.442695, %v171_v61  ;;  %v178_v0 = vmul.f32 1.442695, %v177_v62 }
 0x37d   :  { %383 = vpow2.f32 %v172_v63 }
 0x37e   :  { %385 = vpow2.f32 %v178_v0 }
 0x37f   :  { %v113_v12 = vpop.permute.xlu0 %112 }
 0x380   :  { %v115_v33 = vadd.f32 %v113_v12, %v98_v29  ;;  %v116_v36 = vadd.f32 %v113_v12, %v101_v31 }
 0x383   :  { %v384_v1 = vpop.eup %383 }
 0x384   :  { %v386_v2 = vpop.eup %385  ;;  %v349_v3 = vadd.f32 -1.0, %v384_v1 }
 0x385   :  { %v350_v4 = vadd.f32 -1.0, %v386_v2  ;;  %v431_v2 = vmov 5  }
 0x386   :  { %v175_v6 = vsel %vm170_vm8, %v167_v59, %v349_v3  ;;  %380 = vset.pattern.permute.xlu0 %v431_v2 }
 0x387   :  { %196 = vrot.lane.b32.xlu1 %v175_v6, %s419_s17  ;;  %v181_v7 = vsel %vm176_vm9, %v169_v60, %v350_v4 }
 0x388   :  { %182 = vrot.lane.b32.xlu2 %v181_v7, %s419_s17  ;;  %231 = vmatpush.msra.mxu1 %v181_v7 }
 0x38a   :  { %232 = vmatpush.msra.mxu1 %v175_v6 }
 0x3e2   :  { %v183_v8 = vpop.permute.xlu2 %182 }
 0x3e3   :  { %v184_v9 = vsel %vm34_vm0, %v183_v8, %v181_v7 }
 0x3e4   :  { %185 = vrot.lane.b32.xlu2 %v184_v9, %s419_s17 }
 0x3f9   :  { %v197_v10 = vpop.permute.xlu1 %196 }
 0x3fa   :  { %v198_v11 = vsel %vm34_vm0, %v197_v10, %v175_v6 }
 0x3fb   :  { %199 = vrot.lane.b32.xlu1 %v198_v11, %s419_s17 }
 0x43e   :  { %v186_v15 = vpop.permute.xlu2 %185 }
 0x43f   :  { %v187_v17 = vsel %vm34_vm0, %v186_v15, %v181_v7 }
 0x46d   :  { %v200_v13 = vpop.permute.xlu1 %199 }
 0x46e   :  { %v201_v14 = vsel %vm34_vm0, %v200_v13, %v175_v6 }
 0x46f   :  { %203 = vrot.lane.b32.xlu1 %v201_v14, %s421_s19  ;;  %206 = vrot.lane.b32.xlu2 %v201_v14, %s423_s20 }
 0x477   :  { %192 = vrot.lane.b32.xlu2 %v187_v17, %s422_s0  ;;  %189 = vrot.lane.b32.xlu1 %v187_v17, %s420_s18 }
 0x47f   :  { %212 = vperm.xlu1 %378, %v474_v5  }
 0x4c9   :  { %v207_v22 = vpop.permute.xlu2 %206 }
 0x4d1   :  { %v193_v26 = vpop.permute.xlu2 %192 }
 0x4e1   :  { %v204_v23 = vpop.permute.xlu1 %203 }
 0x4e2   :  { %v209_v24 = vsel %vm477_vm1, %v204_v23, %v207_v22 }
 0x4e3   :  { %252 = vmatpush.msra.mxu2 %v209_v24 }
 0x4e5   :  { %253 = vmatpush.msra.mxu2 %v181_v7 }
 0x4e7   :  { %254 = vmatpush.msra.mxu2 %v175_v6 }
 0x4e8   :  { %352 = vmatmul.msk.f32.vlgmr.msra.gmra.mxu2 %vm62_vm3, %v210_v25 }
 0x4e9   :  { %v190_v27 = vpop.permute.xlu1 %189 }
 0x4ea   :  { %v195_v28 = vsel %vm483_vm2, %v190_v27, %v193_v26 }
 0x4eb   :  { %233 = vmatpush.msra.mxu1 %v195_v28 }
 0x4ec   :  { %351 = vmatmul.msk.f32.vlgmr.msra.gmra.mxu1 %vm62_vm3, %v210_v25 }
 0x4f1   :  { %v213_v30 = vpop.permute.xlu1 %212 }
 0x569   :  { %v235_v32 = vpop.f32.mrf.mxu1 }
 0x56a   :  { %v236_v34 = vadd.f32 %v235_v32, %v213_v30 }
 0x56b   :  { %v256_v35 = vpop.f32.mrf.mxu2 }
 0x56c   :  { %v238_v37 = vadd.f32 %v236_v34, %v115_v33  ;;  %v257_v38 = vadd.f32 %v256_v35, %v213_v30 }
 0x56e   :  { %v259_v39 = vadd.f32 %v257_v38, %v116_v36  ;;  %v260_v40 = vsel %vm117_vm4, %v238_v37, 0.0  ;;  %v267_v41 = vmul.f32 %v238_v37, %v238_v37 }
 0x56f   :  { %261 = vadd.xlane.f32.xlu2 %v260_v40 }
 0x570   :  { %v263_v16 = vsel %vm117_vm4, %v259_v39, 0.0  ;;  %v268_v42 = vsel %vm117_vm4, %v267_v41, 0.0  ;;  %v271_v43 = vmul.f32 %v259_v39, %v259_v39 }
 0x571   :  { %264 = vadd.xlane.f32.xlu1 %v263_v16  ;;  %269 = vadd.xlane.f32.xlu0 %v268_v42 }
 0x572   :  { %v272_v44 = vsel %vm117_vm4, %v271_v43, 0.0 }
 0x577   :  { %273 = vadd.xlane.f32.xlu2 %v272_v44 }
 0x5e2   :  { %v262_v46 = vpop.xlane.xlu2 %261 }
 0x5e4   :  { %v265_v47 = vpop.xlane.xlu1 %264  ;;  %v270_v50 = vpop.xlane.xlu0 %269 }
 0x5e5   :  { %v266_v48 = vadd.f32 %v265_v47, %v262_v46 }
 0x5e7   :  { %v276_v49 = vmul.f32 0.015625, %v266_v48 }
 0x5e9   :  { %v278_v53 = vmul.f32 %v276_v49, %v276_v49 }
 0x5ea   :  { %v274_v51 = vpop.xlane.xlu2 %273 }
 0x5eb   :  { %v275_v52 = vadd.f32 %v274_v51, %v270_v50 }
 0x5ed   :  { %v277_v54 = vmul.f32 0.015625, %v275_v52 }
 0x5ef   :  { %v279_v55 = vsub.f32 %v277_v54, %v278_v53 }
 0x5f1   :  { %v280_v56 = vadd.f32 0.0001, %v279_v55 }
 0x5f3   :  { %387 = vrsqrt.f32 %v280_v56  ;;  %vm287_vm11 = vweird.f32 %v280_v56 }
 0x5f9   :  { %v388_v57 = vpop.eup %387 }
 0x5fa   :  { %v282_v58 = vmul.f32 %v388_v57, %v280_v56  ;;  %vm288_vm10 = vweird.f32 %v388_v57 }
 0x5fb   :  { %vm289_vm12 = vmor %vm287_vm11, %vm288_vm10 }
 0x5fc   :  { %v283_v59 = vmul.f32 %v388_v57, %v282_v58 }
 0x5fe   :  { %v284_v60 = vmul.f32 0.5, %v283_v59 }
 0x600   :  { %v285_v61 = vsub.f32 1.5, %v284_v60 }
 0x602   :  { %v286_v62 = vmul.f32 %v388_v57, %v285_v61 }
 0x604   :  { %v290_v63 = vsel %vm289_vm12, %v388_v57, %v286_v62 }
 0x605   :  { %v291_v0 = vmul.f32 %v290_v63, %v474_v5 }
 0x607   :  { %300 = vperm.xlu2 %379, %v291_v0   ;;  %v292_v1 = vmul.f32 %v291_v0, %v276_v49 }
 0x609   :  { %294 = vrot.lane.b32.xlu1 %v292_v1, %s426_s26 }
 0x661   :  { %v301_v6 = vpop.permute.xlu2 %300 }
 0x662   :  { %v303_v7 = vmul.f32 %v301_v6, %v238_v37  ;;  %v310_v8 = vmul.f32 %v301_v6, %v259_v39 }
 0x67b   :  { %v295_v3 = vpop.permute.xlu1 %294 }
 0x67c   :  { %v297_v4 = vsub.f32 %v474_v5, %v295_v3 }
 0x67e   :  { %306 = vperm.xlu0 %380, %v297_v4  }
 0x6f0   :  { %v307_v9 = vpop.permute.xlu0 %306 }
 0x6f1   :  { %v309_v10 = vadd.f32 %v307_v9, %v303_v7  ;;  %v311_v11 = vadd.f32 %v310_v8, %v307_v9 }
 0x6f3   :  { %v313_v13 = vmin.f32 %v309_v10, 0.0  ;;  %v320_v14 = vmin.f32 %v311_v11, 0.0  ;;  %vm312_vm13 = vcmp.gt.f32.partialorder %v309_v10, 0.0  ;;  %vm319_vm14 = vcmp.gt.f32.partialorder %v311_v11, 0.0 }
 0x6f5   :  { %v314_v15 = vmul.f32 1.442695, %v313_v13  ;;  %v321_v17 = vmul.f32 1.442695, %v320_v14 }
 0x6f7   :  { %389 = vpow2.f32 %v314_v15 }
 0x6f8   :  { %391 = vpow2.f32 %v321_v17 }
 0x6fd   :  { %v390_v5 = vpop.eup %389 }
 0x6fe   :  { %v392_v18 = vpop.eup %391  ;;  %v353_v19 = vadd.f32 -1.0, %v390_v5 }
 0x6ff   :  { %v354_v20 = vadd.f32 -1.0, %v392_v18 }
 0x700   :  { %v317_v21 = vsel %vm312_vm13, %v309_v10, %v353_v19 }
 0x701   :  { %318 = vst.msk [vmem:[#allocation2] sm:$0xff] %vm117_vm4, %v317_v21  ;;  %v324_v22 = vsel %vm319_vm14, %v311_v11, %v354_v20 }
 0x702   :  { %326 = vst.msk [vmem:[#allocation2 + $0x8] sm:$0xff] %vm117_vm4, %v324_v22 }
 0x703   :  { %339 = dma.vmem_to_hbm [thread:$0]  %s332_s2, 256, %s334_s9, [#allocation3], %s433_s10, %s433_s10, %s434_s11  }
 0x704   :  { %417 = dma.done.wait [#allocation3], 256  }
 0x705   :  { %418 = vsyncadd [#allocation3], 4294967040 }
 0x706   :  { %344 = vsyncpa [#allocation3], 1 }

</bundles_post_ra>
